<compile_context>
chip_gen: v5e
topology: v5e:2x2
jax: 0.10.0
libtpu: 0.0.40
codegen_flags: <defaults>
</compile_context>

<pallas_src>
import functools
import math

import jax
import jax.numpy as jnp
from jax.experimental import pallas as pl
from jax.experimental.pallas import tpu as pltpu


def _round_up(x, m):
    return ((x + m - 1) // m) * m


def _sublane(dtype):
    # Sub-32-bit dtypes pack along sublanes: 8 rows (32-bit), 16 (16-bit), 32 (8-bit).
    bits = jnp.dtype(dtype).itemsize * 8
    return max(8, 256 // bits)


def _vmem_capacity_bytes():
    try:
        return int(pltpu.get_tpu_info().vmem_capacity_bytes)
    except Exception:
        return 64 * 1024 * 1024  # v7x per-TC size: safe lower bound everywhere


def _vmem_limit(need_bytes, vmem_cap):
    # Actual (already double-buffered) need + headroom, clamped to the device.
    want = need_bytes + (8 << 20)
    return int(max(16 << 20, min(want, vmem_cap - (4 << 20))))


# --------------------------------------------------------------------------
# Path 1: resident table, single vocab tile, direct store.
# --------------------------------------------------------------------------
def _embed_resident_kernel(ids_ref, tab_ref, out_ref):
    # ids_ref: (TM, 1) int32 | tab_ref: (vt, D) resident | out_ref: (TM, D)
    tm = ids_ref.shape[0]
    vt = tab_ref.shape[0]
    col = jax.lax.broadcasted_iota(jnp.int32, (tm, vt), 1)
    one_hot = (ids_ref[...] == col).astype(tab_ref.dtype)
    out_ref[...] = jnp.dot(
        one_hot, tab_ref[...], preferred_element_type=jnp.float32
    ).astype(out_ref.dtype)


# --------------------------------------------------------------------------
# Path 2: streamed vocab tiles, accumulate directly into out_ref.
# --------------------------------------------------------------------------
def _embed_streamed_kernel(ids_ref, tab_ref, out_ref):
    j = pl.program_id(1)

    @pl.when(j == 0)
    def _():
        out_ref[...] = jnp.zeros_like(out_ref)

    tm = ids_ref.shape[0]
    vt = tab_ref.shape[0]
    col = jax.lax.broadcasted_iota(jnp.int32, (tm, vt), 1)
    # Scalar-dependent shift applied to the (tm, 1) ids column, not the iota.
    one_hot = ((ids_ref[...] - j * vt) == col).astype(tab_ref.dtype)
    # Exact accumulation in out dtype: exactly one vocab tile contributes a
    # nonzero row per token; every other tile adds exact 0.0.
    out_ref[...] += jnp.dot(
        one_hot, tab_ref[...], preferred_element_type=jnp.float32
    ).astype(out_ref.dtype)


# --------------------------------------------------------------------------
# Path 3: large vocab -> per-row DMA gather from HBM (manual pipelining).
# --------------------------------------------------------------------------
_GATHER_NBUF = 8


def _embed_gather_kernel(ids_ref, tab_hbm, out_ref, sems, *, nbuf):
    # ids_ref : (n_pad,) int32 in SMEM (scalar-prefetched, pre-clamped to [0,V))
    # tab_hbm : (V, D) table left in HBM (pl.ANY)
    # out_ref : (TM, D) VMEM output tile, rows filled by row DMAs
    tm = out_ref.shape[0]
    base = pl.program_id(0) * tm

    def start(t):
        pltpu.make_async_copy(
            tab_hbm.at[ids_ref[base + t]], out_ref.at[t], sems.at[t % nbuf]
        ).start()

    @pl.loop(0, nbuf)
    def _prime(t):
        start(t)

    @pl.loop(0, tm)
    def _drain(t):
        # Wait descriptor only needs matching shapes + the right semaphore.
        pltpu.make_async_copy(
            tab_hbm.at[0], out_ref.at[0], sems.at[t % nbuf]
        ).wait()

        @pl.when(t + nbuf < tm)
        def _():
            start(t + nbuf)


# --------------------------------------------------------------------------
# Wrappers
# --------------------------------------------------------------------------
def _embed_onehot(ids_2d, table, n_pad, tm, *, vt_max, budget, vmem_cap):
    V, D = table.shape
    t_dtype = table.dtype
    t_bytes = jnp.dtype(t_dtype).itemsize
    sub_v = _sublane(t_dtype)

    v_pad_min = _round_up(V, sub_v)
    # Cap the vocab tile so a double-buffered table tile takes <= ~1/3 budget.
    vt_cap = max(sub_v, ((budget // 3) // (2 * D * t_bytes)) // sub_v * sub_v)
    vt = max(sub_v, min(_round_up(vt_max, sub_v), vt_cap, v_pad_min))
    v_pad = _round_up(V, vt)

    tab = table
    if v_pad != V:
        tab = jnp.pad(tab, ((0, v_pad - V), (0, 0)))  # zero rows, never selected

    n_tok_tiles = n_pad // tm
    need = 2 * tm * 4 + 2 * vt * D * t_bytes + 2 * tm * D * t_bytes

    if v_pad == vt:
        # Single resident vocab tile: no reduction axis, no accumulation.
        return pl.pallas_call(
            _embed_resident_kernel,
            out_shape=jax.ShapeDtypeStruct((n_pad, D), t_dtype),
            grid_spec=pltpu.PrefetchScalarGridSpec(
                num_scalar_prefetch=0,
                grid=(n_tok_tiles,),
                in_specs=[
                    pl.BlockSpec((tm, 1), lambda i: (i, 0)),
                    pl.BlockSpec((vt, D), lambda i: (0, 0)),  # resident table
                ],
                out_specs=pl.BlockSpec((tm, D), lambda i: (i, 0)),
            ),
            compiler_params=pltpu.CompilerParams(
                dimension_semantics=("parallel",),
                vmem_limit_bytes=_vmem_limit(need, vmem_cap),
            ),
        )(ids_2d, tab)

    # Streamed vocab tiles (reduction axis j), accumulate into out_ref.
    return pl.pallas_call(
        _embed_streamed_kernel,
        out_shape=jax.ShapeDtypeStruct((n_pad, D), t_dtype),
        grid_spec=pltpu.PrefetchScalarGridSpec(
            num_scalar_prefetch=0,
            grid=(n_tok_tiles, v_pad // vt),
            in_specs=[
                pl.BlockSpec((tm, 1), lambda i, j: (i, 0)),
                pl.BlockSpec((vt, D), lambda i, j: (j, 0)),
            ],
            out_specs=pl.BlockSpec((tm, D), lambda i, j: (i, 0)),
        ),
        compiler_params=pltpu.CompilerParams(
            dimension_semantics=("parallel", "arbitrary"),
            vmem_limit_bytes=_vmem_limit(need, vmem_cap),
        ),
    )(ids_2d, tab)


def _embed_gather(flat_ids, table, n_pad, tm, vmem_cap):
    V, D = table.shape
    t_bytes = jnp.dtype(table.dtype).itemsize
    # Clamp ids: an out-of-range id must not become an out-of-bounds row DMA.
    ids = jnp.clip(flat_ids, 0, V - 1)
    nbuf = min(_GATHER_NBUF, tm)
    need = 2 * tm * D * t_bytes + (1 << 20)

    return pl.pallas_call(
        functools.partial(_embed_gather_kernel, nbuf=nbuf),
        out_shape=jax.ShapeDtypeStruct((n_pad, D), table.dtype),
        grid_spec=pltpu.PrefetchScalarGridSpec(
            num_scalar_prefetch=1,
            grid=(n_pad // tm,),
            in_specs=[pl.BlockSpec(memory_space=pl.ANY)],  # table stays in HBM
            out_specs=pl.BlockSpec((tm, D), lambda i, ids_ref: (i, 0)),
            scratch_shapes=[pltpu.SemaphoreType.DMA((nbuf,))],
        ),
        compiler_params=pltpu.CompilerParams(
            dimension_semantics=("arbitrary",),
            vmem_limit_bytes=_vmem_limit(need, vmem_cap),
        ),
    )(ids, table)


def embedder_forward(token_ids, embed_table, *, tm_max=1024, vt_max=512,
                     onehot_table_budget=None):
    """nn.Embedding forward: token_ids (B, S) int -> (B, S, D) in table dtype."""
    B, S = token_ids.shape
    V, D = embed_table.shape
    n_tok = B * S
    t_dtype = embed_table.dtype
    t_bytes = jnp.dtype(t_dtype).itemsize

    vmem_cap = _vmem_capacity_bytes()
    budget = (vmem_cap * 3) // 4  # leave headroom for compiler-internal scratch

    # ---- token tiling: balanced tiles, >= 2 tiles when possible (megacore) ----
    sub_tok = max(8, _sublane(t_dtype))
    tm_cap = max(sub_tok,
                 ((budget // 3) // (2 * D * t_bytes)) // sub_tok * sub_tok)
    tm_max_eff = max(sub_tok, min(_round_up(tm_max, sub_tok), tm_cap))
    n_tiles = max(1, math.ceil(n_tok / tm_max_eff))
    if n_tok >= 2 * sub_tok:
        n_tiles = max(n_tiles, 2)          # keep both TCs busy on v7x
    tm = _round_up(math.ceil(n_tok / n_tiles), sub_tok)
    n_pad = _round_up(n_tok, tm)

    flat_ids = token_ids.reshape(-1).astype(jnp.int32)
    if n_pad != n_tok:
        flat_ids = jnp.pad(flat_ids, (0, n_pad - n_tok))  # padded tokens -> id 0

    # ---- path selection ----
    sub_v = _sublane(t_dtype)
    table_bytes = _round_up(V, sub_v) * D * t_bytes
    if onehot_table_budget is None:
        onehot_table_budget = budget

    if table_bytes > onehot_table_budget:
        out = _embed_gather(flat_ids, embed_table, n_pad, tm, vmem_cap)
    else:
        out = _embed_onehot(flat_ids.reshape(n_pad, 1), embed_table, n_pad, tm,
                            vt_max=vt_max, budget=budget, vmem_cap=vmem_cap)

    return out[:n_tok].reshape(B, S, D)


if __name__ == "__main__":
    key = jax.random.PRNGKey(0)
    k_emb, k_ids, k_emb2, k_ids2, k_emb3, k_ids3 = jax.random.split(key, 6)

    # --- main config (small, matches the module spec) -> resident path ---
    vocab_size, d_model, batch, seq = 32, 128, 2, 8
    embed_table = jax.random.normal(k_emb, (vocab_size, d_model), dtype=jnp.float32)
    token_ids = jax.random.randint(k_ids, (batch, seq), 0, vocab_size,
                                   dtype=jnp.int32)

    out = jax.block_until_ready(embedder_forward(token_ids, embed_table))
    ref = jnp.take(embed_table, token_ids, axis=0)
    assert out.shape == (batch, seq, d_model)
    assert jnp.allclose(out, ref), "resident path mismatch"

    # --- exercise the streamed (multi-vocab-tile) path ---
    tab2 = jax.random.normal(k_emb2, (64, d_model), dtype=jnp.float32)
    ids2 = jax.random.randint(k_ids2, (batch, seq), 0, 64, dtype=jnp.int32)
    out2 = jax.block_until_ready(embedder_forward(ids2, tab2, vt_max=16))
    assert jnp.allclose(out2, jnp.take(tab2, ids2, axis=0)), "streamed path mismatch"

    # --- exercise the HBM row-gather path (as used for large vocabularies) ---
    tab3 = jax.random.normal(k_emb3, (512, d_model), dtype=jnp.float32)
    ids3 = jax.random.randint(k_ids3, (batch, seq), 0, 512, dtype=jnp.int32)
    out3 = jax.block_until_ready(
        embedder_forward(ids3, tab3, onehot_table_budget=1))
    assert jnp.allclose(out3, jnp.take(tab3, ids3, axis=0)), "gather path mismatch"

    print("KERNEL_OK")
</pallas_src>

<mosaic_0001>
module attributes {stable_mosaic.version = 11 : i64} {
  func.func @_embed_resident_kernel(%arg0: i32, %arg1: memref<8x1xi32, #tpu.memory_space<vmem>>, %arg2: memref<32x128xf32, #tpu.memory_space<vmem>>, %arg3: memref<8x128xf32, #tpu.memory_space<vmem>>) attributes {dimension_semantics = [#tpu.dimension_semantics<parallel>], iteration_bounds = array<i64: 2>, scalar_prefetch = 0 : i64, scratch_operands = 0 : i64, tpu.core_type = #tpu.core_type<tc>, window_params = [{transform_indices = @transform_0, window_bounds = array<i64: 8, 1>}, {pipeline_mode = #tpu.pipeline_mode<synchronous>, transform_indices = @transform_1, window_bounds = array<i64: 32, 128>}, {transform_indices = @transform_2, window_bounds = array<i64: 8, 128>}]} {
    %0 = tpu.iota {dimensions = array<i32: 1>} : vector<8x32xi32>
    %c0 = arith.constant 0 : index
    %c0_0 = arith.constant 0 : index
    %1 = vector.load %arg1[%c0, %c0_0] : memref<8x1xi32, #tpu.memory_space<vmem>>, vector<8x1xi32>
    %2 = vector.broadcast %1 : vector<8x1xi32> to vector<8x32xi32>
    %3 = arith.cmpi eq, %2, %0 : vector<8x32xi32>
    %4 = arith.extui %3 : vector<8x32xi1> to vector<8x32xi32>
    %5 = arith.sitofp %4 : vector<8x32xi32> to vector<8x32xf32>
    %c0_1 = arith.constant 0 : index
    %c0_2 = arith.constant 0 : index
    %6 = vector.load %arg2[%c0_1, %c0_2] : memref<32x128xf32, #tpu.memory_space<vmem>>, vector<32x128xf32>
    %cst = arith.constant dense<0.000000e+00> : vector<8x128xf32>
    %7 = tpu.matmul %5, %6, %cst {dimension_numbers = #tpu.dot_dimension_numbers<[1], [0], [0], [1], [0, 0, 1, 1], [], []>} : vector<8x32xf32>, vector<32x128xf32>, vector<8x128xf32> -> vector<8x128xf32>
    %c0_3 = arith.constant 0 : index
    %c0_4 = arith.constant 0 : index
    %8 = vector.load %arg3[%c0_3, %c0_4] : memref<8x128xf32, #tpu.memory_space<vmem>>, vector<8x128xf32>
    tpu.vector_store %arg3[%c0_3, %c0_4], %7 {strides = array<i32>} : memref<8x128xf32, #tpu.memory_space<vmem>>, vector<8x128xf32>,
    return
  }
  func.func @transform_0(%arg0: i32) -> (i32, i32) {
    %c0_i32 = arith.constant 0 : i32
    %c0_i32_0 = arith.constant 0 : i32
    return %arg0, %c0_i32 : i32, i32
  }
  func.func @transform_1(%arg0: i32) -> (i32, i32) {
    %c0_i32 = arith.constant 0 : i32
    %c0_i32_0 = arith.constant 0 : i32
    %c0_i32_1 = arith.constant 0 : i32
    return %c0_i32, %c0_i32_0 : i32, i32
  }
  func.func @transform_2(%arg0: i32) -> (i32, i32) {
    %c0_i32 = arith.constant 0 : i32
    %c0_i32_0 = arith.constant 0 : i32
    return %arg0, %c0_i32 : i32, i32
  }
}

</mosaic_0001>

<bundles_post_ra>
// kernel: tpu_custom_call.1
= control target key start
LH: loop header
LB: loop body
LE: loop exit
PB: predicated region body
PF: predicated region fallthrough
CT: control target
= control target key end

     0   :  { %7 = vsyncpa [#allocation3], 0  ;;  %s563_s0 = inlined_call_operand.vmem [shape: s32[16,1], index: 0, kind: input, shape index: {}]   ;;  %s564_s1 = inlined_call_operand.hbm [shape: f32[32,128], index: 1, kind: input, shape index: {}]   ;;  %s565_s2 = inlined_call_operand.hbm [shape: f32[16,128], index: 2, kind: output, shape index: {}]  }
   0x1   :  { %8 = vsyncpa [#allocation4], 0 }
   0x2   :  { %10 = vsyncpa [#allocation4 + $0x1], 0  ;;  %s468_s9 = smov 0   ;;  %s470_s10 = smov 0  }
   0x3   :  { %s472_s11 = smov 0   ;;  %s474_s12 = smov 0  }
   0x4 LB: > { %s489_s13 = sadd.s32 4294967295, %s446_s12   ;;  %s281_s14 = sadd.s32 4294967294, %s446_s12   ;;  %s446_s12 = sphi %s474_s12, %s571_s12   ;;  %s442_s11 = sphi %s472_s11, %s570_s11   ;;  %s438_s10 = sphi %s470_s10, %s569_s10   ;;  %s434_s9 = sphi %s468_s9, %s568_s9  }
   0x5   : > { %s493_s15 = sadd.s32 1, %s446_s12   ;;  %s70_s16 = sadd.s32 1, %s442_s11 }
   0x6   : > { %s67_s17 = ssub.s32 %s446_s12, %s493_s15  ;;  %p80_p0 = scmp.ne.s32.totalorder %s442_s11, %s438_s10 }
   0x7   : > { %p68_p1 = scmp.eq.s32.totalorder %s67_s17, 0  ;;  %p81_p2 = scmp.eq.s32.totalorder %s489_s13, 1 }
   0x8   : > { %p86_p3 = scmp.ne.s32.totalorder %s438_s10, %s434_s9  ;;  %p87_p4 = scmp.eq.s32.totalorder %s281_s14, 1 }
   0x9   : > { %s504_s18 = scalar_select %p68_p1, %s442_s11, %s70_s16  }
   0xa   : > { %p506_p5 = por %p81_p2, %p80_p0  ;;  %p510_p6 = por %p87_p4, %p86_p3 }
   0xb   : > { %p282_p7 = scmp.ge.s32.totalorder %s446_s12, 1  ;;  %p94_p8 = scmp.lt.s32.totalorder %s446_s12, 3 }
   0xc   : > { %p309_p9 = scmp.eq.s32.totalorder %s489_s13, 0  ;;  %s105_s23 = sshll.u32 %s564_s1, 4  ;;  %s106_s23 = int_to_ptr.hbm [resolvable:$true] %s105_s23 }
   0xd   : > { %p95_p10 = pnand %p282_p7, %p94_p8  ;;  %s448_s24 = smov [#allocation2]  }
   0xe   : > { %s107_s25 = sshll.u32 %s448_s24, 4  ;;  %s449_s26 = smov 128   ;;  %s108_s25 = int_to_ptr.vmem [resolvable:$true] %s107_s25 }
   0xf   : > { %p301_p11 = pneg %p95_p10  ;;  %s450_s27 = smov 8  }
  0x10   : > { %130 = sbr.rel (%p95_p10) target bundleno = 275 (0x113), region = 28 }
  0x11   : > { %p302_p12 = pnand %p309_p9, %p301_p11 }
  0x13   : > { %304 = dma.hbm_to_vmem [thread:$0]  (!%p302_p12), %s106_s23, 512, %s108_s25, [#allocation3], %s449_s26, %s449_s26, %s450_s27  }
  0x15   : > { %425 = dma.done.wait (%p309_p9), [#allocation3], 512  }
  0x16   : > { %427 = vsyncadd (%p309_p9), [#allocation3], 4294966784  ;;  %p152_p13 = scmp.lt.s32.totalorder %s489_s13, 1  ;;  %v451_v0 = vmov 0   ;;  %v168_v2 = vld [vmem:[#allocation2 + $0x18] sm:$0xff]  ;;  %v167_v3 = vld [vmem:[#allocation2 + $0x10] sm:$0xff]  ;;  %v156_v6 = vlaneseq }
  0x17   : > { %349 = vset.pattern.permute.xlu0 %v451_v0  ;;  %185 = vmatpush.msra.mxu0 %v168_v2  ;;  %v166_v4 = vld [vmem:[#allocation2 + $0x8] sm:$0xff]  ;;  %v165_v5 = vld [vmem:[#allocation2] sm:$0xff]  ;;  %vm169_vm0 = vcmask 261120   ;;  %v452_v9 = vmov 0.0   ;;  %s149_s5 = sand.u32 1, %s438_s10   ;;  %s292_s7 = sshll.u32 %s489_s13, 3 }
  0x18   : > { %s153_s28 = scalar_select %p152_p13, %s489_s13, 1  ;;  %v157_v7 = vand.u32 127, %v156_v6 }
  0x19   : > { %186 = vmatpush.msra.mxu0 %v167_v3  ;;  %s287_s6 = sshll.u32 %s149_s5, 3  ;;  %s205_s16 = scalar_lea.hbm %s565_s2, %s292_s7 }
  0x1a   : > { %s288_s29 = sshll.u32 %s153_s28, 3  ;;  %s151_s17 = scalar_lea.vmem [#allocation5], %s287_s6 }
  0x1b   : > { %s155_s4 = scalar_lea.vmem %s563_s0, %s288_s29  ;;  %187 = vmatpush.msra.mxu0 %v166_v4  ;;  %s207_s21 = sshll.u32 %s151_s17, 4  ;;  %s208_s21 = int_to_ptr.vmem [resolvable:$true] %s207_s21 }
  0x1c   : > { %v158_v1 = vld [vmem:[%s155_s4] sm:$0xff]  ;;  %s209_s22 = sshll.u32 %s205_s16, 4  ;;  %s195_s23 = scalar_lea.sflag [#allocation4], %s149_s5  ;;  %s210_s22 = int_to_ptr.hbm [resolvable:$true] %s209_s22 }
  0x1d   : > { %160 = vperm.xlu0 %349, %v158_v1   ;;  %188 = vmatpush.msra.mxu0 %v165_v5  ;;  %s394_s24 = sshra.s32 %s210_s22, 4  ;;  %s400_s27 = scalar_lea.hbm %s565_s2, 16  ;;  %s395_s24 = int_to_ptr.hbm [resolvable:$true] %s394_s24 }
  0x1e   : > { %s396_s25 = scalar_lea.hbm %s395_s24, 8  ;;  %p401_p3 = scmp.lt.s32.totalorder %s395_s24, %s565_s2 }
  0x1f   : > { %p397_p0 = scmp.ne.s32.totalorder %s395_s24, %s396_s25  ;;  %p402_p4 = scmp.lt.s32.totalorder %s400_s27, %s396_s25 }
  0x21   : > { %p398_p1 = pnand %p397_p0, %p506_p5  ;;  %p403_p7 = por %p402_p4, %p401_p3 }
  0x23   : > { %p399_p2 = pneg %p398_p1 }
  0x25   : > { %p404_p8 = pnand %p403_p7, %p399_p2 }
  0x8f   : > { %v161_v8 = vpop.permute.xlu0 %160 }
  0x90   : > { %vm162_vm1 = vcmp.eq.s32.totalorder %v161_v8, %v157_v7 }
  0x91   : > { %v289_v10 = vsel %vm162_vm1, 1.0, %v452_v9 }
  0x92   : > { %290 = vmatmul.msk.f32.vlgmr.msra.gmra.mxu0 %vm169_vm0, %v289_v10 }
 0x10f   : > { %v190_v11 = vpop.f32.mrf.mxu0 }
 0x110   : > { %193 = vst [vmem:[%s151_s17] sm:$0xff] %v190_v11 }
 0x111   : > { %407 = shalt.err (!%p404_p8)
}
 0x112   : > { %299 = dma.vmem_to_hbm [thread:$0]  (%p506_p5), %s208_s21, 128, %s210_s22, %s195_s23  }
 0x113 PF: > { %p311_p9 = scmp.ge.s32.totalorder %s446_s12, 2  ;;  %s221_s30 = sand.u32 1, %s434_s9  }
 0x114   : > { %s222_s3 = scalar_lea.sflag [#allocation4], %s221_s30 }
 0x115   : > { %p306_p10 = pnand %p311_p9, %p510_p6 }
 0x117   : > { %p307_p11 = pneg %p306_p10 }
 0x119   : > { %429 = dma.done.wait (%p307_p11), %s222_s3, 128  }
 0x11a   : > { %431 = vsyncadd (%p307_p11), %s222_s3, 4294967168  ;;  %p13_p12 = scmp.ge.s32.totalorder %s493_s15, 4   ;;  %s568_s9 = smov %s438_s10 }
 0x11b   : > { %s569_s10 = smov %s442_s11  ;;  %s570_s11 = smov %s504_s18 }
 0x11c   : > { %s571_s12 = smov %s493_s15  ;;  %15 = sbr.rel (!%p13_p12) target bundleno = 4 (0x4), region = 68 }
 0x121   :  { %228 = vsyncpa [#allocation3], 1 }
 0x122   :  { %230 = vsyncpa [#allocation3 + $0x1], 1 }
 0x123   :  { %231 = vsyncpa [#allocation4], 1 }
 0x124   :  { %233 = vsyncpa [#allocation4 + $0x1], 1 }

</bundles_post_ra>
